<compile_context>
chip_gen: v5e
topology: v5e:2x2
jax: 0.10.0
libtpu: 0.0.40
codegen_flags: <defaults>
</compile_context>

<pallas_src>
import functools

import jax
import jax.numpy as jnp
from jax import lax
from jax.experimental import pallas as pl
from jax.experimental.pallas import tpu as pltpu


def _resnet_block1d_kernel(
    im1_ref,   # (N*L, KCp)        conv1 im2col, zero-padded contraction (lane-dense)
    w1_ref,    # (KCp, 2*Cout)     fused conv1 | skip weight
    w2_ref,    # (K*2*Cout, 2*Cout) fused conv2 | skip-passthrough weight
    p_ref,     # (8, 2*Cout)       packed per-channel params
    out_ref,   # (N*L, 2*Cout)     lane-dense output (first Cout cols are real)
    *, n, length, pad, ksize, cout, eps,
):
    N, L, P, K = n, length, pad, ksize
    C2 = 2 * cout
    rows = N * L

    pv = p_ref[...]                      # (8, C2)
    b1f = pv[0:1, :]                     # [b1 | b_skip]
    g1p = pv[1:2, :]                     # [gamma1 | 1]
    be1p = pv[2:3, :]                    # [beta1  | 0]
    b2f = pv[3:4, :]                     # [b2 | 0]
    g2p = pv[4:5, :]                     # [gamma2 | 1]
    be2p = pv[5:6, :]                    # [beta2  | 0]

    lane = lax.broadcasted_iota(jnp.int32, (rows, C2), 1)
    is_conv = lane < cout                                        # conv vs skip lanes
    l_idx = lax.broadcasted_iota(jnp.int32, (rows, C2), 0) % L   # position within sample

    # ---- conv1 + 1x1 skip in one MXU matmul (skip lives in lanes [Cout:2*Cout)) ----
    h1 = jnp.dot(im1_ref[...], w1_ref[...],
                 preferred_element_type=jnp.float32) + b1f

    # ---- BatchNorm1d #1 (train-mode, biased stats) + ReLU on conv lanes only ----
    mu1 = jnp.mean(h1, axis=0, keepdims=True)
    var1 = jnp.mean((h1 - mu1) * (h1 - mu1), axis=0, keepdims=True)
    bn1 = (h1 - mu1) * (g1p * lax.rsqrt(var1 + eps)) + be1p
    a1 = jnp.where(is_conv, jnp.maximum(bn1, 0.0), h1)           # skip lanes untouched

    # ---- conv2 im2col via sublane rolls + per-sample boundary masks (no scratch) ----
    taps = []
    for k in range(K):
        d = k - P
        if d == 0:
            taps.append(a1)
        else:
            rolled = pltpu.roll(a1, shift=(-d) % rows, axis=0)   # rolled[r] = a1[r + d]
            valid = jnp.logical_and(l_idx + d >= 0, l_idx + d < L)
            taps.append(jnp.where(valid, rolled, 0.0))
    im2 = jnp.concatenate(taps, axis=-1)                         # (rows, K*C2)

    h2 = jnp.dot(im2, w2_ref[...],
                 preferred_element_type=jnp.float32) + b2f       # skip passes through

    # ---- BatchNorm1d #2 on conv lanes only ----
    mu2 = jnp.mean(h2, axis=0, keepdims=True)
    var2 = jnp.mean((h2 - mu2) * (h2 - mu2), axis=0, keepdims=True)
    bn2 = (h2 - mu2) * (g2p * lax.rsqrt(var2 + eps)) + be2p
    h2m = jnp.where(is_conv, bn2, h2)

    # ---- residual add (skip lanes rolled onto conv lanes) + final ReLU ----
    swapped = pltpu.roll(h2m, shift=cout, axis=1)
    out_ref[...] = jnp.maximum(h2m + swapped, 0.0).astype(out_ref.dtype)


def resnet_block1d_pallas(x, params, *, kernel_size=5, eps=1e-5):
    """Forward of ResNetBlock1d (layers=2, train-mode BatchNorm).

    x: (N, Cin, L) float32 in the PyTorch NCL layout.
    Returns (N, Cout, L) float32.
    """
    N, Cin, L = x.shape
    K = kernel_size
    P = K // 2
    Cout = params["w1"].shape[0]
    C2 = 2 * Cout
    rows = N * L
    KC = K * Cin
    KCp = ((KC + 127) // 128) * 128      # lane-dense padded contraction for conv1

    # --- Layout plumbing (wrapper-side glue) ---
    x_nlc = jnp.transpose(x, (0, 2, 1))                          # (N, L, Cin)
    x_pad = jnp.pad(x_nlc, ((0, 0), (P, P), (0, 0)))             # (N, L+2P, Cin)
    im1 = jnp.concatenate([x_pad[:, k:k + L, :] for k in range(K)],
                          axis=-1).reshape(rows, KC)             # col = k*Cin + ci
    im1 = jnp.pad(im1, ((0, 0), (0, KCp - KC)))                  # (rows, KCp)

    # Fused conv1 | skip weight: (KCp, 2*Cout)
    w1_mat = jnp.transpose(params["w1"], (2, 1, 0)).reshape(KC, Cout)
    w_sk = jnp.transpose(params["w_skip"][:, :, 0], (1, 0))      # (Cin, Cout)
    w1f = jnp.zeros((KCp, C2), jnp.float32)
    w1f = w1f.at[:KC, :Cout].set(w1_mat)
    w1f = w1f.at[P * Cin:(P + 1) * Cin, Cout:].set(w_sk)         # skip = center tap

    # Fused conv2 | skip-passthrough weight: (K*C2, C2)
    w2_mat = jnp.transpose(params["w2"], (2, 1, 0))              # (K, Cout, Cout)
    w2_blocks = jnp.zeros((K, C2, C2), jnp.float32)
    w2_blocks = w2_blocks.at[:, :Cout, :Cout].set(w2_mat)
    w2_blocks = w2_blocks.at[P, Cout:, Cout:].set(jnp.eye(Cout, dtype=jnp.float32))
    w2f = w2_blocks.reshape(K * C2, C2)

    # Packed per-channel params: one (8, C2) DMA instead of nine tiny ones.
    zc = jnp.zeros((Cout,), jnp.float32)
    oc = jnp.ones((Cout,), jnp.float32)
    pvec = jnp.stack([
        jnp.concatenate([params["b1"], params["b_skip"]]),
        jnp.concatenate([params["g1"], oc]),
        jnp.concatenate([params["beta1"], zc]),
        jnp.concatenate([params["b2"], zc]),
        jnp.concatenate([params["g2"], oc]),
        jnp.concatenate([params["beta2"], zc]),
        jnp.concatenate([zc, zc]),
        jnp.concatenate([zc, zc]),
    ], axis=0)                                                   # (8, C2)

    kernel = functools.partial(
        _resnet_block1d_kernel,
        n=N, length=L, pad=P, ksize=K, cout=Cout, eps=eps)

    out_full = pl.pallas_call(
        kernel,
        out_shape=jax.ShapeDtypeStruct((rows, C2), jnp.float32),
        in_specs=[pl.BlockSpec(memory_space=pltpu.MemorySpace.VMEM)
                  for _ in range(4)],
        out_specs=pl.BlockSpec(memory_space=pltpu.MemorySpace.VMEM),
    )(im1, w1f, w2f, pvec)

    # Back to PyTorch NCL layout (glue): keep only the real Cout channels.
    return jnp.transpose(out_full[:, :Cout].reshape(N, L, Cout), (0, 2, 1))


def _reference(x, params, *, kernel_size=5, eps=1e-5):
    """Pure-JAX reference with identical math (train-mode BN, biased var)."""
    P = kernel_size // 2

    def conv1d(h, w, b, pad):
        y = lax.conv_general_dilated(
            h, w, window_strides=(1,), padding=[(pad, pad)],
            dimension_numbers=("NCH", "OIH", "NCH"))
        return y + b[None, :, None]

    def bn_train(h, g, bta):
        mu = jnp.mean(h, axis=(0, 2), keepdims=True)
        var = jnp.mean((h - mu) ** 2, axis=(0, 2), keepdims=True)
        return (h - mu) * lax.rsqrt(var + eps) * g[None, :, None] + bta[None, :, None]

    h = conv1d(x, params["w1"], params["b1"], P)
    h = jax.nn.relu(bn_train(h, params["g1"], params["beta1"]))
    h = conv1d(h, params["w2"], params["b2"], P)
    h = bn_train(h, params["g2"], params["beta2"])
    s = conv1d(x, params["w_skip"], params["b_skip"], 0)
    return jax.nn.relu(h + s)


if __name__ == "__main__":
    # Small shapes consistent with ResNetBlock1d(in_channels=4, out_channels=64,
    # kernel_size=5, layers=2) applied to a (batch=2, channels=4, seq=16) input.
    N, Cin, L = 2, 4, 16
    Cout, K = 64, 5

    key = jax.random.PRNGKey(0)
    ks = jax.random.split(key, 11)
    s = 0.1
    params = {
        "w1": s * jax.random.normal(ks[0], (Cout, Cin, K), jnp.float32),
        "b1": s * jax.random.normal(ks[1], (Cout,), jnp.float32),
        "g1": 1.0 + s * jax.random.normal(ks[2], (Cout,), jnp.float32),
        "beta1": s * jax.random.normal(ks[3], (Cout,), jnp.float32),
        "w2": s * jax.random.normal(ks[4], (Cout, Cout, K), jnp.float32),
        "b2": s * jax.random.normal(ks[5], (Cout,), jnp.float32),
        "g2": 1.0 + s * jax.random.normal(ks[6], (Cout,), jnp.float32),
        "beta2": s * jax.random.normal(ks[7], (Cout,), jnp.float32),
        "w_skip": s * jax.random.normal(ks[8], (Cout, Cin, 1), jnp.float32),
        "b_skip": s * jax.random.normal(ks[9], (Cout,), jnp.float32),
    }
    x = jax.random.normal(ks[10], (N, Cin, L), dtype=jnp.float32)

    y = resnet_block1d_pallas(x, params, kernel_size=K)
    y = jax.block_until_ready(y)

    y_ref = _reference(x, params, kernel_size=K)
    assert y.shape == (N, Cout, L), y.shape
    assert y.dtype == jnp.float32
    max_err = float(jnp.max(jnp.abs(y - y_ref)))
    assert bool(jnp.allclose(y, y_ref, atol=2e-3, rtol=2e-3)), max_err

    print("KERNEL_OK")
</pallas_src>

<mosaic_0001>
module attributes {stable_mosaic.version = 11 : i64} {
  func.func @_resnet_block1d_kernel(%arg0: memref<32x128xf32, #tpu.memory_space<vmem>>, %arg1: memref<128x128xf32, #tpu.memory_space<vmem>>, %arg2: memref<640x128xf32, #tpu.memory_space<vmem>>, %arg3: memref<8x128xf32, #tpu.memory_space<vmem>>, %arg4: memref<32x128xf32, #tpu.memory_space<vmem>>) attributes {dimension_semantics = [], scalar_prefetch = 0 : i64, scratch_operands = 0 : i64, tpu.core_type = #tpu.core_type<tc>} {
    %c0 = arith.constant 0 : index
    %c0_0 = arith.constant 0 : index
    %0 = vector.load %arg3[%c0, %c0_0] : memref<8x128xf32, #tpu.memory_space<vmem>>, vector<8x128xf32>
    %1 = vector.extract_strided_slice %0 {offsets = [0, 0], sizes = [1, 128], strides = [1, 1]} : vector<8x128xf32> to vector<1x128xf32>
    %2 = vector.extract_strided_slice %0 {offsets = [1, 0], sizes = [1, 128], strides = [1, 1]} : vector<8x128xf32> to vector<1x128xf32>
    %3 = vector.extract_strided_slice %0 {offsets = [2, 0], sizes = [1, 128], strides = [1, 1]} : vector<8x128xf32> to vector<1x128xf32>
    %4 = vector.extract_strided_slice %0 {offsets = [3, 0], sizes = [1, 128], strides = [1, 1]} : vector<8x128xf32> to vector<1x128xf32>
    %5 = vector.extract_strided_slice %0 {offsets = [4, 0], sizes = [1, 128], strides = [1, 1]} : vector<8x128xf32> to vector<1x128xf32>
    %6 = vector.extract_strided_slice %0 {offsets = [5, 0], sizes = [1, 128], strides = [1, 1]} : vector<8x128xf32> to vector<1x128xf32>
    %7 = tpu.iota {dimensions = array<i32: 1>} : vector<32x128xi32>
    %c64_i32 = arith.constant 64 : i32
    %8 = vector.broadcast %c64_i32 : i32 to vector<32x128xi32>
    %9 = arith.cmpi slt, %7, %8 : vector<32x128xi32>
    %10 = tpu.iota {dimensions = array<i32: 0>} : vector<32x128xi32>
    %c16_i32 = arith.constant 16 : i32
    %c0_i32 = arith.constant 0 : i32
    %11 = arith.cmpi eq, %c16_i32, %c0_i32 : i32
    %c1_i32 = arith.constant 1 : i32
    %12 = arith.select %11, %c1_i32, %c16_i32 : i32
    %13 = vector.broadcast %12 : i32 to vector<32x128xi32>
    %14 = arith.remsi %10, %13 : vector<32x128xi32>
    %c0_i32_1 = arith.constant 0 : i32
    %15 = vector.broadcast %c0_i32_1 : i32 to vector<32x128xi32>
    %16 = arith.cmpi ne, %14, %15 : vector<32x128xi32>
    %c0_i32_2 = arith.constant 0 : i32
    %17 = vector.broadcast %c0_i32_2 : i32 to vector<32x128xi32>
    %18 = arith.cmpi slt, %14, %17 : vector<32x128xi32>
    %c0_i32_3 = arith.constant 0 : i32
    %19 = arith.cmpi slt, %12, %c0_i32_3 : i32
    %20 = vector.broadcast %19 : i1 to vector<32x128xi1>
    %21 = vector.broadcast %20 : vector<32x128xi1> to vector<32x128xi1>
    %22 = arith.xori %18, %21 : vector<32x128xi1>
    %23 = arith.andi %22, %16 : vector<32x128xi1>
    %24 = vector.broadcast %12 : i32 to vector<32x128xi32>
    %25 = arith.addi %14, %24 : vector<32x128xi32>
    %26 = arith.select %23, %25, %14 : vector<32x128xi1>, vector<32x128xi32>
    %c0_4 = arith.constant 0 : index
    %c0_5 = arith.constant 0 : index
    %27 = vector.load %arg0[%c0_4, %c0_5] : memref<32x128xf32, #tpu.memory_space<vmem>>, vector<32x128xf32>
    %c0_6 = arith.constant 0 : index
    %c0_7 = arith.constant 0 : index
    %28 = vector.load %arg1[%c0_6, %c0_7] : memref<128x128xf32, #tpu.memory_space<vmem>>, vector<128x128xf32>
    %cst = arith.constant dense<0.000000e+00> : vector<32x128xf32>
    %29 = tpu.matmul %27, %28, %cst {dimension_numbers = #tpu.dot_dimension_numbers<[1], [0], [0], [1], [0, 0, 1, 1], [], []>} : vector<32x128xf32>, vector<128x128xf32>, vector<32x128xf32> -> vector<32x128xf32>
    %30 = vector.broadcast %1 : vector<1x128xf32> to vector<32x128xf32>
    %31 = arith.addf %29, %30 : vector<32x128xf32>
    %cst_8 = arith.constant dense<0.000000e+00> : vector<128xf32>
    %32 = vector.multi_reduction <add>, %31, %cst_8 [0] : vector<32x128xf32> to vector<128xf32>
    %33 = vector.shape_cast %32 : vector<128xf32> to vector<1x128xf32>
    %cst_9 = arith.constant 3.200000e+01 : f32
    %34 = vector.broadcast %cst_9 : f32 to vector<1x128xf32>
    %35 = arith.divf %33, %34 : vector<1x128xf32>
    %36 = vector.broadcast %35 : vector<1x128xf32> to vector<32x128xf32>
    %37 = arith.subf %31, %36 : vector<32x128xf32>
    %38 = vector.broadcast %35 : vector<1x128xf32> to vector<32x128xf32>
    %39 = arith.subf %31, %38 : vector<32x128xf32>
    %40 = arith.mulf %37, %39 : vector<32x128xf32>
    %cst_10 = arith.constant dense<0.000000e+00> : vector<128xf32>
    %41 = vector.multi_reduction <add>, %40, %cst_10 [0] : vector<32x128xf32> to vector<128xf32>
    %42 = vector.shape_cast %41 : vector<128xf32> to vector<1x128xf32>
    %cst_11 = arith.constant 3.200000e+01 : f32
    %43 = vector.broadcast %cst_11 : f32 to vector<1x128xf32>
    %44 = arith.divf %42, %43 : vector<1x128xf32>
    %45 = vector.broadcast %35 : vector<1x128xf32> to vector<32x128xf32>
    %46 = arith.subf %31, %45 : vector<32x128xf32>
    %cst_12 = arith.constant 9.99999974E-6 : f32
    %47 = vector.broadcast %cst_12 : f32 to vector<1x128xf32>
    %48 = arith.addf %44, %47 : vector<1x128xf32>
    %49 = math.rsqrt %48 : vector<1x128xf32>
    %50 = arith.mulf %2, %49 : vector<1x128xf32>
    %51 = vector.broadcast %50 : vector<1x128xf32> to vector<32x128xf32>
    %52 = arith.mulf %46, %51 : vector<32x128xf32>
    %53 = vector.broadcast %3 : vector<1x128xf32> to vector<32x128xf32>
    %54 = arith.addf %52, %53 : vector<32x128xf32>
    %cst_13 = arith.constant 0.000000e+00 : f32
    %55 = vector.broadcast %cst_13 : f32 to vector<32x128xf32>
    %56 = arith.maximumf %54, %55 : vector<32x128xf32>
    %57 = arith.select %9, %56, %31 : vector<32x128xi1>, vector<32x128xf32>
    %c2_i32 = arith.constant 2 : i32
    %58 = tpu.dynamic_rotate %57 by %c2_i32 dim 0 : vector<32x128xf32>, i32 -> vector<32x128xf32>
    %c-2_i32 = arith.constant -2 : i32
    %59 = vector.broadcast %c-2_i32 : i32 to vector<32x128xi32>
    %60 = arith.addi %26, %59 : vector<32x128xi32>
    %c0_i32_14 = arith.constant 0 : i32
    %61 = vector.broadcast %c0_i32_14 : i32 to vector<32x128xi32>
    %62 = arith.cmpi sge, %60, %61 : vector<32x128xi32>
    %c-2_i32_15 = arith.constant -2 : i32
    %63 = vector.broadcast %c-2_i32_15 : i32 to vector<32x128xi32>
    %64 = arith.addi %26, %63 : vector<32x128xi32>
    %c16_i32_16 = arith.constant 16 : i32
    %65 = vector.broadcast %c16_i32_16 : i32 to vector<32x128xi32>
    %66 = arith.cmpi slt, %64, %65 : vector<32x128xi32>
    %67 = arith.andi %62, %66 : vector<32x128xi1>
    %cst_17 = arith.constant 0.000000e+00 : f32
    %68 = vector.broadcast %cst_17 : f32 to vector<32x128xf32>
    %69 = arith.select %67, %58, %68 : vector<32x128xi1>, vector<32x128xf32>
    %c1_i32_18 = arith.constant 1 : i32
    %70 = tpu.dynamic_rotate %57 by %c1_i32_18 dim 0 : vector<32x128xf32>, i32 -> vector<32x128xf32>
    %c-1_i32 = arith.constant -1 : i32
    %71 = vector.broadcast %c-1_i32 : i32 to vector<32x128xi32>
    %72 = arith.addi %26, %71 : vector<32x128xi32>
    %c0_i32_19 = arith.constant 0 : i32
    %73 = vector.broadcast %c0_i32_19 : i32 to vector<32x128xi32>
    %74 = arith.cmpi sge, %72, %73 : vector<32x128xi32>
    %c-1_i32_20 = arith.constant -1 : i32
    %75 = vector.broadcast %c-1_i32_20 : i32 to vector<32x128xi32>
    %76 = arith.addi %26, %75 : vector<32x128xi32>
    %c16_i32_21 = arith.constant 16 : i32
    %77 = vector.broadcast %c16_i32_21 : i32 to vector<32x128xi32>
    %78 = arith.cmpi slt, %76, %77 : vector<32x128xi32>
    %79 = arith.andi %74, %78 : vector<32x128xi1>
    %cst_22 = arith.constant 0.000000e+00 : f32
    %80 = vector.broadcast %cst_22 : f32 to vector<32x128xf32>
    %81 = arith.select %79, %70, %80 : vector<32x128xi1>, vector<32x128xf32>
    %c31_i32 = arith.constant 31 : i32
    %82 = tpu.dynamic_rotate %57 by %c31_i32 dim 0 : vector<32x128xf32>, i32 -> vector<32x128xf32>
    %c1_i32_23 = arith.constant 1 : i32
    %83 = vector.broadcast %c1_i32_23 : i32 to vector<32x128xi32>
    %84 = arith.addi %26, %83 : vector<32x128xi32>
    %c0_i32_24 = arith.constant 0 : i32
    %85 = vector.broadcast %c0_i32_24 : i32 to vector<32x128xi32>
    %86 = arith.cmpi sge, %84, %85 : vector<32x128xi32>
    %c1_i32_25 = arith.constant 1 : i32
    %87 = vector.broadcast %c1_i32_25 : i32 to vector<32x128xi32>
    %88 = arith.addi %26, %87 : vector<32x128xi32>
    %c16_i32_26 = arith.constant 16 : i32
    %89 = vector.broadcast %c16_i32_26 : i32 to vector<32x128xi32>
    %90 = arith.cmpi slt, %88, %89 : vector<32x128xi32>
    %91 = arith.andi %86, %90 : vector<32x128xi1>
    %cst_27 = arith.constant 0.000000e+00 : f32
    %92 = vector.broadcast %cst_27 : f32 to vector<32x128xf32>
    %93 = arith.select %91, %82, %92 : vector<32x128xi1>, vector<32x128xf32>
    %c30_i32 = arith.constant 30 : i32
    %94 = tpu.dynamic_rotate %57 by %c30_i32 dim 0 : vector<32x128xf32>, i32 -> vector<32x128xf32>
    %c2_i32_28 = arith.constant 2 : i32
    %95 = vector.broadcast %c2_i32_28 : i32 to vector<32x128xi32>
    %96 = arith.addi %26, %95 : vector<32x128xi32>
    %c0_i32_29 = arith.constant 0 : i32
    %97 = vector.broadcast %c0_i32_29 : i32 to vector<32x128xi32>
    %98 = arith.cmpi sge, %96, %97 : vector<32x128xi32>
    %c2_i32_30 = arith.constant 2 : i32
    %99 = vector.broadcast %c2_i32_30 : i32 to vector<32x128xi32>
    %100 = arith.addi %26, %99 : vector<32x128xi32>
    %c16_i32_31 = arith.constant 16 : i32
    %101 = vector.broadcast %c16_i32_31 : i32 to vector<32x128xi32>
    %102 = arith.cmpi slt, %100, %101 : vector<32x128xi32>
    %103 = arith.andi %98, %102 : vector<32x128xi1>
    %cst_32 = arith.constant 0.000000e+00 : f32
    %104 = vector.broadcast %cst_32 : f32 to vector<32x128xf32>
    %105 = arith.select %103, %94, %104 : vector<32x128xi1>, vector<32x128xf32>
    %106 = tpu.concatenate %69, %81, %57, %93, %105 in 1 : vector<32x128xf32>, vector<32x128xf32>, vector<32x128xf32>, vector<32x128xf32>, vector<32x128xf32> -> vector<32x640xf32>
    %c0_33 = arith.constant 0 : index
    %c0_34 = arith.constant 0 : index
    %107 = vector.load %arg2[%c0_33, %c0_34] : memref<640x128xf32, #tpu.memory_space<vmem>>, vector<640x128xf32>
    %cst_35 = arith.constant dense<0.000000e+00> : vector<32x128xf32>
    %108 = tpu.matmul %106, %107, %cst_35 {dimension_numbers = #tpu.dot_dimension_numbers<[1], [0], [0], [1], [0, 0, 1, 1], [], []>} : vector<32x640xf32>, vector<640x128xf32>, vector<32x128xf32> -> vector<32x128xf32>
    %109 = vector.broadcast %4 : vector<1x128xf32> to vector<32x128xf32>
    %110 = arith.addf %108, %109 : vector<32x128xf32>
    %cst_36 = arith.constant dense<0.000000e+00> : vector<128xf32>
    %111 = vector.multi_reduction <add>, %110, %cst_36 [0] : vector<32x128xf32> to vector<128xf32>
    %112 = vector.shape_cast %111 : vector<128xf32> to vector<1x128xf32>
    %cst_37 = arith.constant 3.200000e+01 : f32
    %113 = vector.broadcast %cst_37 : f32 to vector<1x128xf32>
    %114 = arith.divf %112, %113 : vector<1x128xf32>
    %115 = vector.broadcast %114 : vector<1x128xf32> to vector<32x128xf32>
    %116 = arith.subf %110, %115 : vector<32x128xf32>
    %117 = vector.broadcast %114 : vector<1x128xf32> to vector<32x128xf32>
    %118 = arith.subf %110, %117 : vector<32x128xf32>
    %119 = arith.mulf %116, %118 : vector<32x128xf32>
    %cst_38 = arith.constant dense<0.000000e+00> : vector<128xf32>
    %120 = vector.multi_reduction <add>, %119, %cst_38 [0] : vector<32x128xf32> to vector<128xf32>
    %121 = vector.shape_cast %120 : vector<128xf32> to vector<1x128xf32>
    %cst_39 = arith.constant 3.200000e+01 : f32
    %122 = vector.broadcast %cst_39 : f32 to vector<1x128xf32>
    %123 = arith.divf %121, %122 : vector<1x128xf32>
    %124 = vector.broadcast %114 : vector<1x128xf32> to vector<32x128xf32>
    %125 = arith.subf %110, %124 : vector<32x128xf32>
    %cst_40 = arith.constant 9.99999974E-6 : f32
    %126 = vector.broadcast %cst_40 : f32 to vector<1x128xf32>
    %127 = arith.addf %123, %126 : vector<1x128xf32>
    %128 = math.rsqrt %127 : vector<1x128xf32>
    %129 = arith.mulf %5, %128 : vector<1x128xf32>
    %130 = vector.broadcast %129 : vector<1x128xf32> to vector<32x128xf32>
    %131 = arith.mulf %125, %130 : vector<32x128xf32>
    %132 = vector.broadcast %6 : vector<1x128xf32> to vector<32x128xf32>
    %133 = arith.addf %131, %132 : vector<32x128xf32>
    %134 = arith.select %9, %133, %110 : vector<32x128xi1>, vector<32x128xf32>
    %c64_i32_41 = arith.constant 64 : i32
    %135 = tpu.dynamic_rotate %134 by %c64_i32_41 dim 1 : vector<32x128xf32>, i32 -> vector<32x128xf32>
    %136 = arith.addf %134, %135 : vector<32x128xf32>
    %cst_42 = arith.constant 0.000000e+00 : f32
    %137 = vector.broadcast %cst_42 : f32 to vector<32x128xf32>
    %138 = arith.maximumf %136, %137 : vector<32x128xf32>
    %c0_43 = arith.constant 0 : index
    %c0_44 = arith.constant 0 : index
    %139 = vector.load %arg4[%c0_43, %c0_44] : memref<32x128xf32, #tpu.memory_space<vmem>>, vector<32x128xf32>
    tpu.vector_store %arg4[%c0_43, %c0_44], %138 {strides = array<i32>} : memref<32x128xf32, #tpu.memory_space<vmem>>, vector<32x128xf32>,
    return
  }
}

</mosaic_0001>

<bundles_post_ra>
// kernel: tpu_custom_call.1
= control target key start
LH: loop header
LB: loop body
LE: loop exit
PB: predicated region body
PF: predicated region fallthrough
CT: control target
= control target key end

     0   :  { %9 = vsyncpa [#allocation3], 0  ;;  %s1146_s0 = inlined_call_operand.hbm [shape: f32[32,128], index: 0, kind: input, shape index: {}]   ;;  %s1147_s1 = inlined_call_operand.hbm [shape: f32[128,128], index: 1, kind: input, shape index: {}]   ;;  %s1148_s2 = inlined_call_operand.hbm [shape: f32[640,128], index: 2, kind: input, shape index: {}]   ;;  %s1149_s3 = inlined_call_operand.hbm [shape: f32[8,128], index: 3, kind: input, shape index: {}]   ;;  %s1150_s4 = inlined_call_operand.hbm [shape: f32[32,128], index: 4, kind: output, shape index: {}]  }
   0x1   :  { %10 = vsyncpa [#allocation6], 0 }
   0x2   :  { %11 = vsyncpa [#allocation9], 0 }
   0x3   :  { %12 = vsyncpa [#allocation4], 0  ;;  %s30_s17 = sshll.u32 %s1147_s1, 4  ;;  %s871_s18 = smov [#allocation5]   ;;  %s31_s17 = int_to_ptr.hbm [resolvable:$true] %s30_s17 }
   0x4   :  { %s32_s19 = sshll.u32 %s871_s18, 4  ;;  %s17_s22 = sshll.u32 %s1146_s0, 4  ;;  %s33_s19 = int_to_ptr.vmem [resolvable:$true] %s32_s19  ;;  %s18_s22 = int_to_ptr.hbm [resolvable:$true] %s17_s22 }
   0x5   :  { %s872_s23 = smov 128   ;;  %s873_s24 = smov 8  }
   0x6   :  { %38 = dma.hbm_to_vmem [thread:$0]  %s31_s17, 2048, %s33_s19, [#allocation6], %s872_s23, %s872_s23, %s873_s24  }
   0x7   :  { %s874_s25 = smov [#allocation2]   ;;  %s43_s1 = sshll.u32 %s1148_s2, 4  ;;  %s44_s1 = int_to_ptr.hbm [resolvable:$true] %s43_s1 }
   0x8   :  { %s19_s26 = sshll.u32 %s874_s25, 4  ;;  %s57_s30 = sshll.u32 %s1149_s3, 4  ;;  %s20_s26 = int_to_ptr.vmem [resolvable:$true] %s19_s26  ;;  %s58_s30 = int_to_ptr.hbm [resolvable:$true] %s57_s30 }
   0x9   :  { %25 = dma.hbm_to_vmem [thread:$0]  %s18_s22, 512, %s20_s26, [#allocation3], %s872_s23, %s872_s23, %s873_s24  }
   0xa   :  { %s875_s5 = smov [#allocation7]   ;;  %s876_s7 = smov [#allocation8]  }
   0xb   :  { %s45_s6 = sshll.u32 %s875_s5, 4  ;;  %s59_s2 = sshll.u32 %s876_s7, 4  ;;  %s46_s6 = int_to_ptr.vmem [resolvable:$true] %s45_s6  ;;  %s60_s2 = int_to_ptr.vmem [resolvable:$true] %s59_s2 }
   0xc   :  { %51 = dma.hbm_to_vmem [thread:$0]  %s44_s1, 10240, %s46_s6, [#allocation6], %s872_s23, %s872_s23, %s873_s24  }
   0xd   :  { %62 = dma.hbm_to_vmem [thread:$0]  %s58_s30, 128, %s60_s2, [#allocation9]  }
   0xe   :  { %863 = dma.done.wait [#allocation3], 512  }
   0xf   :  { %864 = vsyncadd [#allocation3], 4294966784 }
  0x10   :  { %865 = dma.done.wait [#allocation6], 12288  }
  0x11   :  { %866 = vsyncadd [#allocation6], 4294955008 }
  0x12   :  { %867 = dma.done.wait [#allocation9], 128  }
  0x13   :  { %868 = vsyncadd [#allocation9], 4294967168  ;;  %v155_v0 = vld [vmem:[#allocation5 + $0x78] sm:$0xff]  ;;  %v154_v1 = vld [vmem:[#allocation5 + $0x70] sm:$0xff]  ;;  %v877_v22 = vmov 32.0   ;;  %s878_s3 = smov 64  }
  0x14   :  { %157 = vmatpush.msra.mxu0 %v155_v0  ;;  %v153_v2 = vld [vmem:[#allocation5 + $0x68] sm:$0xff]  ;;  %v152_v3 = vld [vmem:[#allocation5 + $0x60] sm:$0xff]  ;;  %v151_v4 = vld [vmem:[#allocation5 + $0x58] sm:$0xff]  ;;  %737 = vrcp.f32 %v877_v22  ;;  %s879_s8 = smov [#allocation10]   ;;  %s673_s12 = sshll.u32 %s1150_s4, 4  ;;  %s674_s12 = int_to_ptr.hbm [resolvable:$true] %s673_s12 }
  0x15   :  { %v150_v5 = vld [vmem:[#allocation5 + $0x50] sm:$0xff]  ;;  %v149_v6 = vld [vmem:[#allocation5 + $0x48] sm:$0xff]  ;;  %v148_v7 = vld [vmem:[#allocation5 + $0x40] sm:$0xff]  ;;  %s671_s9 = sshll.u32 %s879_s8, 4  ;;  %s672_s9 = int_to_ptr.vmem [resolvable:$true] %s671_s9 }
  0x16   :  { %158 = vmatpush.msra.mxu0 %v154_v1  ;;  %v147_v8 = vld [vmem:[#allocation5 + $0x38] sm:$0xff]  ;;  %v146_v9 = vld [vmem:[#allocation5 + $0x30] sm:$0xff]  ;;  %v145_v10 = vld [vmem:[#allocation5 + $0x28] sm:$0xff] }
  0x17   :  { %v144_v11 = vld [vmem:[#allocation5 + $0x20] sm:$0xff]  ;;  %v143_v12 = vld [vmem:[#allocation5 + $0x18] sm:$0xff]  ;;  %v142_v13 = vld [vmem:[#allocation5 + $0x10] sm:$0xff] }
  0x18   :  { %159 = vmatpush.msra.mxu0 %v153_v2  ;;  %v141_v14 = vld [vmem:[#allocation5 + $0x8] sm:$0xff]  ;;  %v140_v15 = vld [vmem:[#allocation5] sm:$0xff]  ;;  %v138_v18 = vld [vmem:[#allocation2 + $0x10] sm:$0xff] }
  0x19   :  { %v136_v16 = vld [vmem:[#allocation2] sm:$0xff]  ;;  %v137_v17 = vld [vmem:[#allocation2 + $0x8] sm:$0xff]  ;;  %v139_v19 = vld [vmem:[#allocation2 + $0x18] sm:$0xff] }
  0x1a   :  { %160 = vmatpush.msra.mxu0 %v152_v3  ;;  %v926_v23 = vld [vmem:[#allocation8] sm:$0xff]  ;;  %v738_v26 = vpop.eup %737  ;;  %v414_v42 = vld [vmem:[#allocation7 + $0x178] sm:$0xff]  ;;  %v413_v44 = vld [vmem:[#allocation7 + $0x170] sm:$0xff] }
  0x1b   :  { %v156_v25 = vperm.slane %v926_v23, 0  ;;  %v196_v30 = vmul.f32 32.0, %v738_v26  ;;  %vm200_vm0 = vweird.f32 %v738_v26  ;;  %506 = vmatpush.msra.mxu3 %v414_v42  ;;  %v382_v46 = vld [vmem:[#allocation7 + $0x78] sm:$0xff]  ;;  %v412_v50 = vld [vmem:[#allocation7 + $0x168] sm:$0xff]  ;;  %v381_v52 = vld [vmem:[#allocation7 + $0x70] sm:$0xff] }
  0x1c   :  { %161 = vmatpush.msra.mxu0 %v151_v4  ;;  %v398_v47 = vld [vmem:[#allocation7 + $0xf8] sm:$0xff]  ;;  %448 = vmatpush.msra.mxu1 %v382_v46  ;;  %v397_v53 = vld [vmem:[#allocation7 + $0xf0] sm:$0xff]  ;;  %v411_v55 = vld [vmem:[#allocation7 + $0x160] sm:$0xff] }
  0x1d   :  { %v197_v35 = vsub.f32 1.0, %v196_v30  ;;  %507 = vmatpush.msra.mxu3 %v413_v44  ;;  %v941_v48 = vld [vmem:[#allocation7 + $0x1f8] sm:$0xff]  ;;  %477 = vmatpush.msra.mxu2 %v398_v47  ;;  %v946_v54 = vld [vmem:[#allocation7 + $0x1f0] sm:$0xff]  ;;  %v380_v57 = vld [vmem:[#allocation7 + $0x68] sm:$0xff] }
  0x1e   :  { %162 = vmatpush.msra.mxu0 %v150_v5  ;;  %449 = vmatpush.msra.mxu1 %v381_v52  ;;  %v396_v58 = vld [vmem:[#allocation7 + $0xe8] sm:$0xff]  ;;  %v410_v60 = vld [vmem:[#allocation7 + $0x158] sm:$0xff]  ;;  %v379_v0 = vld [vmem:[#allocation7 + $0x60] sm:$0xff] }
  0x1f   :  { %v198_v38 = vmul.f32 %v738_v26, %v197_v35  ;;  %508 = vmatpush.msra.mxu3 %v412_v50  ;;  %478 = vmatpush.msra.mxu2 %v397_v53  ;;  %v950_v59 = vld [vmem:[#allocation7 + $0x1e8] sm:$0xff]  ;;  %v395_v1 = vld [vmem:[#allocation7 + $0xe0] sm:$0xff]  ;;  %v409_v3 = vld [vmem:[#allocation7 + $0x150] sm:$0xff] }
  0x20   :  { %163 = vmatpush.msra.mxu0 %v149_v6  ;;  %450 = vmatpush.msra.mxu1 %v380_v57  ;;  %v962_v2 = vld [vmem:[#allocation7 + $0x1e0] sm:$0xff]  ;;  %v406_v22 = vld [vmem:[#allocation7 + $0x138] sm:$0xff]  ;;  %v372_v44 = vld [vmem:[#allocation7 + $0x28] sm:$0xff] }
  0x21   :  { %v199_v41 = vadd.f32 %v738_v26, %v198_v38  ;;  %509 = vmatpush.msra.mxu3 %v411_v55  ;;  %479 = vmatpush.msra.mxu2 %v396_v58  ;;  %v984_v30 = vld [vmem:[#allocation7 + $0x1c0] sm:$0xff]  ;;  %v390_v35 = vld [vmem:[#allocation7 + $0xb8] sm:$0xff]  ;;  %v993_v46 = vld [vmem:[#allocation7 + $0x1a8] sm:$0xff] }
  0x22   :  { %164 = vmatpush.msra.mxu0 %v148_v7  ;;  %451 = vmatpush.msra.mxu1 %v379_v0  ;;  %v378_v7 = vld [vmem:[#allocation7 + $0x58] sm:$0xff]  ;;  %v403_v42 = vld [vmem:[#allocation7 + $0x120] sm:$0xff]  ;;  %v401_v55 = vld [vmem:[#allocation7 + $0x110] sm:$0xff] }
  0x23   :  { %v943_v49 = vsel %vm200_vm0, %v738_v26, %v199_v41  ;;  %510 = vmatpush.msra.mxu3 %v410_v60  ;;  %480 = vmatpush.msra.mxu2 %v395_v1  ;;  %v391_v26 = vld [vmem:[#allocation7 + $0xc0] sm:$0xff]  ;;  %v990_v41 = vld [vmem:[#allocation7 + $0x1b0] sm:$0xff]  ;;  %v402_v47 = vld [vmem:[#allocation7 + $0x118] sm:$0xff] }
  0x24   :  { %165 = vmatpush.msra.mxu0 %v147_v8  ;;  %v394_v8 = vld [vmem:[#allocation7 + $0xd8] sm:$0xff]  ;;  %452 = vmatpush.msra.mxu1 %v378_v7  ;;  %v387_v52 = vld [vmem:[#allocation7 + $0xa0] sm:$0xff]  ;;  %v400_v0 = vld [vmem:[#allocation7 + $0x108] sm:$0xff] }
  0x25   :  { %511 = vmatpush.msra.mxu3 %v409_v3  ;;  %481 = vmatpush.msra.mxu2 %v394_v8  ;;  %v996_v53 = vld [vmem:[#allocation7 + $0x1a0] sm:$0xff]  ;;  %v370_v57 = vld [vmem:[#allocation7 + $0x18] sm:$0xff]  ;;  %v369_v3 = vld [vmem:[#allocation7 + $0x10] sm:$0xff] }
  0x26   :  { %166 = vmatpush.msra.mxu0 %v146_v9  ;;  %v971_v9 = vld [vmem:[#allocation7 + $0x1d8] sm:$0xff]  ;;  %v399_v7 = vld [vmem:[#allocation7 + $0x100] sm:$0xff] }
  0x27   :  { %v386_v58 = vld [vmem:[#allocation7 + $0x98] sm:$0xff] }
  0x28   :  { %167 = vmatpush.msra.mxu0 %v145_v10  ;;  %v408_v10 = vld [vmem:[#allocation7 + $0x148] sm:$0xff]  ;;  %v999_v60 = vld [vmem:[#allocation7 + $0x198] sm:$0xff] }
  0x29   :  { %512 = vmatpush.msra.mxu3 %v408_v10  ;;  %v368_v10 = vld [vmem:[#allocation7 + $0x8] sm:$0xff] }
  0x2a   :  { %168 = vmatpush.msra.mxu0 %v144_v11 }
  0x2c   :  { %169 = vmatpush.msra.mxu0 %v143_v12 }
  0x2e   :  { %170 = vmatpush.msra.mxu0 %v142_v13  ;;  %v377_v13 = vld [vmem:[#allocation7 + $0x50] sm:$0xff] }
  0x2f   :  { %453 = vmatpush.msra.mxu1 %v377_v13  ;;  %v446_v13 = vld [vmem:[#allocation7 + $0x278] sm:$0xff] }
  0x30   :  { %171 = vmatpush.msra.mxu0 %v141_v14  ;;  %v393_v14 = vld [vmem:[#allocation7 + $0xd0] sm:$0xff] }
  0x31   :  { %482 = vmatpush.msra.mxu2 %v393_v14  ;;  %v367_v14 = vld [vmem:[#allocation7] sm:$0xff] }
  0x32   :  { %172 = vmatpush.msra.mxu0 %v140_v15  ;;  %v976_v15 = vld [vmem:[#allocation7 + $0x1d0] sm:$0xff] }
  0x33   :  { %173 = vmatmul.f32.vlgmr.msra.gmra.mxu0 %v136_v16  ;;  %v407_v16 = vld [vmem:[#allocation7 + $0x140] sm:$0xff] }
  0x34   :  { %535 = vmatpush.msrb.mxu0 %v941_v48  ;;  %513 = vmatpush.msra.mxu3 %v407_v16  ;;  %v383_v16 = vld [vmem:[#allocation7 + $0x80] sm:$0xff] }
  0x36   :  { %536 = vmatpush.msrb.mxu0 %v946_v54  ;;  %514 = vmatpush.msra.mxu3 %v406_v22  ;;  %v443_v22 = vld [vmem:[#allocation7 + $0x260] sm:$0xff] }
  0x38   :  { %537 = vmatpush.msrb.mxu0 %v950_v59 }
  0x3a   :  { %538 = vmatpush.msrb.mxu0 %v962_v2 }
  0x3b   :  { %176 = vmatmul.f32.gmra.mxu0 %v137_v17 }
  0x3c   :  { %539 = vmatpush.msrb.mxu0 %v971_v9 }
  0x3e   :  { %540 = vmatpush.msrb.mxu0 %v976_v15 }
  0x43   :  { %179 = vmatmul.f32.gmra.mxu0 %v138_v18 }
  0x4b   :  { %182 = vmatmul.f32.gmra.mxu0 %v139_v19  ;;  %v376_v19 = vld [vmem:[#allocation7 + $0x48] sm:$0xff] }
  0x4c   :  { %454 = vmatpush.msra.mxu1 %v376_v19  ;;  %v445_v19 = vld [vmem:[#allocation7 + $0x270] sm:$0xff] }
  0xb0   :  { %v174_v20 = vpop.f32.mrf.mxu0 }
  0xb1   :  { %v931_v28 = vadd.f32 %v174_v20, %v156_v25  ;;  %v392_v20 = vld [vmem:[#allocation7 + $0xc8] sm:$0xff] }
  0xb2   :  { %483 = vmatpush.msra.mxu2 %v392_v20  ;;  %v444_v20 = vld [vmem:[#allocation7 + $0x268] sm:$0xff] }
  0xb4   :  { %484 = vmatpush.msra.mxu2 %v391_v26 }
  0xb6   :  { %485 = vmatpush.msra.mxu2 %v390_v35 }
  0xb8   :  { %v177_v21 = vpop.f32.mrf.mxu0 }
  0xb9   :  { %v929_v27 = vadd.f32 %v177_v21, %v156_v25  ;;  %v981_v21 = vld [vmem:[#allocation7 + $0x1c8] sm:$0xff] }
  0xba   :  { %541 = vmatpush.msrb.mxu0 %v981_v21 }
  0xbb   :  { %v186_v31 = vadd.f32 %v929_v27, %v931_v28 }
  0xbc   :  { %542 = vmatpush.msrb.mxu0 %v984_v30 }
  0xc0   :  { %v180_v24 = vpop.f32.mrf.mxu0 }
  0xc1   :  { %v933_v29 = vadd.f32 %v180_v24, %v156_v25 }
  0xc3   :  { %v187_v33 = vadd.f32 %v186_v31, %v933_v29  ;;  %v405_v31 = vld [vmem:[#allocation7 + $0x130] sm:$0xff] }
  0xc4   :  { %515 = vmatpush.msra.mxu3 %v405_v31  ;;  %v441_v31 = vld [vmem:[#allocation7 + $0x250] sm:$0xff] }
  0xc8   :  { %v183_v32 = vpop.f32.mrf.mxu0 }
  0xc9   :  { %v938_v34 = vadd.f32 %v183_v32, %v156_v25  ;;  %v375_v25 = vld [vmem:[#allocation7 + $0x40] sm:$0xff] }
  0xca   :  { %455 = vmatpush.msra.mxu1 %v375_v25 }
  0xcb   :  { %v188_v36 = vadd.f32 %v187_v33, %v938_v34  ;;  %v374_v33 = vld [vmem:[#allocation7 + $0x38] sm:$0xff] }
  0xcc   :  { %456 = vmatpush.msra.mxu1 %v374_v33 }
  0xcd   :  { %v189_v37 = vrot.slane %v188_v36, 4 }
  0xcf   :  { %v190_v39 = vadd.f32 %v189_v37, %v188_v36  ;;  %v987_v36 = vld [vmem:[#allocation7 + $0x1b8] sm:$0xff]  ;;  %v404_v37 = vld [vmem:[#allocation7 + $0x128] sm:$0xff] }
  0xd0   :  { %543 = vmatpush.msrb.mxu0 %v987_v36  ;;  %516 = vmatpush.msra.mxu3 %v404_v37 }
  0xd1   :  { %v191_v40 = vrot.slane %v190_v39, 2 }
  0xd2   :  { %544 = vmatpush.msrb.mxu0 %v990_v41  ;;  %517 = vmatpush.msra.mxu3 %v403_v42  ;;  %v435_v42 = vld [vmem:[#allocation7 + $0x220] sm:$0xff] }
  0xd3   :  { %v192_v43 = vadd.f32 %v191_v40, %v190_v39  ;;  %v373_v39 = vld [vmem:[#allocation7 + $0x30] sm:$0xff] }
  0xd4   :  { %v389_v40 = vld [vmem:[#allocation7 + $0xb0] sm:$0xff]  ;;  %457 = vmatpush.msra.mxu1 %v373_v39  ;;  %545 = vmatpush.msrb.mxu0 %v993_v46  ;;  %v436_v39 = vld [vmem:[#allocation7 + $0x228] sm:$0xff] }
  0xd5   :  { %v193_v45 = vrot.slane %v192_v43, 1  ;;  %486 = vmatpush.msra.mxu2 %v389_v40  ;;  %518 = vmatpush.msra.mxu3 %v402_v47 }
  0xd6   :  { %458 = vmatpush.msra.mxu1 %v372_v44  ;;  %546 = vmatpush.msrb.mxu0 %v996_v53 }
  0xd7   :  { %v194_v51 = vadd.f32 %v193_v45, %v192_v43  ;;  %v388_v45 = vld [vmem:[#allocation7 + $0xa8] sm:$0xff]  ;;  %519 = vmatpush.msra.mxu3 %v401_v55 }
  0xd8   :  { %487 = vmatpush.msra.mxu2 %v388_v45  ;;  %547 = vmatpush.msrb.mxu0 %v999_v60 }
  0xd9   :  { %v202_v56 = vmul.f32 %v943_v49, %v194_v51  ;;  %v371_v51 = vld [vmem:[#allocation7 + $0x20] sm:$0xff]  ;;  %520 = vmatpush.msra.mxu3 %v400_v0 }
  0xda   :  { %459 = vmatpush.msra.mxu1 %v371_v51  ;;  %488 = vmatpush.msra.mxu2 %v387_v52 }
  0xdb   :  { %v953_v61 = vsub.f32 %v931_v28, %v202_v56  ;;  %v956_v62 = vsub.f32 %v929_v27, %v202_v56  ;;  %v959_v63 = vsub.f32 %v933_v29, %v202_v56  ;;  %v965_v4 = vsub.f32 %v938_v34, %v202_v56  ;;  %521 = vmatpush.msra.mxu3 %v399_v7 }
  0xdc   :  { %460 = vmatpush.msra.mxu1 %v370_v57  ;;  %489 = vmatpush.msra.mxu2 %v386_v58 }
  0xdd   :  { %v207_v5 = vmul.f32 %v953_v61, %v953_v61  ;;  %v208_v6 = vmul.f32 %v956_v62, %v956_v62  ;;  %v209_v11 = vmul.f32 %v959_v63, %v959_v63  ;;  %v210_v17 = vmul.f32 %v965_v4, %v965_v4  ;;  %712 = vmatpush.msrb.mxu3 %v446_v13 }
  0xde   :  { %461 = vmatpush.msra.mxu1 %v369_v3 }
  0xdf   :  { %v211_v12 = vadd.f32 %v208_v6, %v207_v5  ;;  %v385_v5 = vld [vmem:[#allocation7 + $0x90] sm:$0xff]  ;;  %713 = vmatpush.msrb.mxu3 %v445_v19 }
  0xe0   :  { %v1002_v6 = vld [vmem:[#allocation7 + $0x190] sm:$0xff]  ;;  %490 = vmatpush.msra.mxu2 %v385_v5  ;;  %462 = vmatpush.msra.mxu1 %v368_v10 }
  0xe1   :  { %v212_v18 = vadd.f32 %v211_v12, %v209_v11  ;;  %v384_v11 = vld [vmem:[#allocation7 + $0x88] sm:$0xff]  ;;  %548 = vmatpush.msrb.mxu0 %v1002_v6  ;;  %714 = vmatpush.msrb.mxu3 %v444_v20 }
  0xe2   :  { %v1006_v12 = vld [vmem:[#allocation7 + $0x188] sm:$0xff]  ;;  %491 = vmatpush.msra.mxu2 %v384_v11  ;;  %463 = vmatpush.msra.mxu1 %v367_v14 }
  0xe3   :  { %v213_v24 = vadd.f32 %v212_v18, %v210_v17  ;;  %v1009_v18 = vld [vmem:[#allocation7 + $0x180] sm:$0xff]  ;;  %549 = vmatpush.msrb.mxu0 %v1006_v12  ;;  %715 = vmatpush.msrb.mxu3 %v443_v22 }
  0xe4   :  { %492 = vmatpush.msra.mxu2 %v383_v16  ;;  %564 = vmatpush.msrb.mxu1 %v446_v13 }
  0xe5   :  { %v214_v32 = vrot.slane %v213_v24, 4  ;;  %550 = vmatpush.msrb.mxu0 %v1009_v18 }
  0xe6   :  { %696 = vmatpush.msrb.mxu2 %v941_v48  ;;  %565 = vmatpush.msrb.mxu1 %v445_v19 }
  0xe7   :  { %v215_v38 = vadd.f32 %v214_v32, %v213_v24  ;;  %v442_v24 = vld [vmem:[#allocation7 + $0x258] sm:$0xff]  ;;  %v440_v32 = vld [vmem:[#allocation7 + $0x248] sm:$0xff] }
  0xe8   :  { %697 = vmatpush.msrb.mxu2 %v946_v54  ;;  %566 = vmatpush.msrb.mxu1 %v444_v20  ;;  %v80_v54 = vlaneseq }
  0xe9   :  { %v216_v43 = vrot.slane %v215_v38, 2  ;;  %716 = vmatpush.msrb.mxu3 %v442_v24 }
  0xea   :  { %698 = vmatpush.msrb.mxu2 %v950_v59  ;;  %567 = vmatpush.msrb.mxu1 %v443_v22  ;;  %v439_v59 = vld [vmem:[#allocation7 + $0x240] sm:$0xff]  ;;  %v1020_v37 = vshrl.u32 %v80_v54, 7  ;;  %v1028_v44 = vand.u32 127, %v80_v54 }
  0xeb   :  { %v217_v50 = vadd.f32 %v216_v43, %v215_v38  ;;  %717 = vmatpush.msrb.mxu3 %v441_v31 }
  0xec   :  { %699 = vmatpush.msrb.mxu2 %v962_v2  ;;  %568 = vmatpush.msrb.mxu1 %v442_v24  ;;  %v438_v2 = vld [vmem:[#allocation7 + $0x238] sm:$0xff]  ;;  %vm82_vm4 = vcmp.lt.s32.totalorder %v1028_v44, 64  ;;  %vm255_vm5 = vcmp.lt.s32.totalorder %v1020_v37, 2  ;;  %v1040_v0 = vadd.s32 8, %v1020_v37  ;;  %vm284_vm7 = vcmp.lt.s32.totalorder %v1020_v37, 1 }
  0xed   :  { %v218_v56 = vrot.slane %v217_v50, 1  ;;  %718 = vmatpush.msrb.mxu3 %v440_v32  ;;  %vm313_vm9 = vcmp.lt.s32.totalorder %v1020_v37, 7  ;;  %v86_v16 = vadd.s32 16, %v1020_v37  ;;  %vm342_vm13 = vcmp.lt.s32.totalorder %v1020_v37, 6 }
  0xee   :  { %700 = vmatpush.msrb.mxu2 %v971_v9  ;;  %569 = vmatpush.msrb.mxu1 %v441_v31 }
  0xef   :  { %v219_v1 = vadd.f32 %v218_v56, %v217_v50  ;;  %719 = vmatpush.msrb.mxu3 %v439_v59  ;;  %v106_v24 = vand.u32 15, %v86_v16 }
  0xf0   :  { %701 = vmatpush.msrb.mxu2 %v976_v15  ;;  %570 = vmatpush.msrb.mxu1 %v440_v32  ;;  %v437_v15 = vld [vmem:[#allocation7 + $0x230] sm:$0xff] }
  0xf1   :  { %v220_v8 = vmul.f32 %v219_v1, %v943_v49  ;;  %720 = vmatpush.msrb.mxu3 %v438_v2 }
  0xf2   :  { %702 = vmatpush.msrb.mxu2 %v981_v21  ;;  %571 = vmatpush.msrb.mxu1 %v439_v59  ;;  %v92_v21 = vand.u32 15, %v1020_v37  ;;  %v87_v59 = vadd.s32 24, %v1020_v37 }
  0xf3   :  { %v221_v17 = vadd.f32 1e-05, %v220_v8  ;;  %721 = vmatpush.msrb.mxu3 %v437_v15 }
  0xf4   :  { %703 = vmatpush.msrb.mxu2 %v984_v30  ;;  %572 = vmatpush.msrb.mxu1 %v438_v2  ;;  %v238_v30 = vperm.slane %v926_v23, 2  ;;  %v289_v52 = vadd.s32 4294967295, %v92_v21 }
  0xf5   :  { %739 = vrsqrt.f32 %v221_v17  ;;  %vm228_vm2 = vweird.f32 %v221_v17  ;;  %722 = vmatpush.msrb.mxu3 %v436_v39 }
  0xf6   :  { %704 = vmatpush.msrb.mxu2 %v987_v36  ;;  %573 = vmatpush.msrb.mxu1 %v437_v15  ;;  %v434_v36 = vld [vmem:[#allocation7 + $0x218] sm:$0xff]  ;;  %vm293_vm8 = vcmp.ge.s32.totalorder %v289_v52, 0 }
  0xf7   :  { %723 = vmatpush.msrb.mxu3 %v435_v42 }
  0xf8   :  { %705 = vmatpush.msrb.mxu2 %v990_v41  ;;  %v260_v41 = vadd.s32 4294967294, %v92_v21  ;;  %574 = vmatpush.msrb.mxu1 %v436_v39 }
  0xf9   :  { %724 = vmatpush.msrb.mxu3 %v434_v36 }
  0xfa   :  { %706 = vmatpush.msrb.mxu2 %v993_v46  ;;  %v433_v46 = vld [vmem:[#allocation7 + $0x210] sm:$0xff]  ;;  %575 = vmatpush.msrb.mxu1 %v435_v42  ;;  %vm264_vm6 = vcmp.ge.s32.totalorder %v260_v41, 0 }
  0xfb   :  { %v740_v25 = vpop.eup %739  ;;  %725 = vmatpush.msrb.mxu3 %v433_v46 }
  0xfc   :  { %v223_v26 = vmul.f32 %v740_v25, %v221_v17  ;;  %vm229_vm1 = vweird.f32 %v740_v25  ;;  %707 = vmatpush.msrb.mxu2 %v996_v53  ;;  %576 = vmatpush.msrb.mxu1 %v434_v36  ;;  %v431_v53 = vld [vmem:[#allocation7 + $0x200] sm:$0xff] }
  0xfd   :  { %vm230_vm3 = vmor %vm228_vm2, %vm229_vm1 }
  0xfe   :  { %v224_v48 = vmul.f32 %v740_v25, %v223_v26  ;;  %708 = vmatpush.msrb.mxu2 %v999_v60  ;;  %577 = vmatpush.msrb.mxu1 %v433_v46  ;;  %v262_v26 = vadd.s32 4294967294, %v106_v24 }
 0x100   :  { %v225_v33 = vmul.f32 0.5, %v224_v48  ;;  %709 = vmatpush.msrb.mxu2 %v1002_v6  ;;  %v291_v48 = vadd.s32 4294967295, %v106_v24  ;;  %vm266_vm11 = vcmp.ge.s32.totalorder %v262_v26, 0 }
 0x102   :  { %v226_v35 = vsub.f32 1.5, %v225_v33  ;;  %710 = vmatpush.msrb.mxu2 %v1006_v12  ;;  %vm295_vm12 = vcmp.ge.s32.totalorder %v291_v48, 0 }
 0x104   :  { %v227_v9 = vmul.f32 %v740_v25, %v226_v35  ;;  %711 = vmatpush.msrb.mxu2 %v1009_v18 }
 0x106   :  { %v231_v38 = vsel %vm230_vm3, %v740_v25, %v227_v9 }
 0x107   :  { %v232_v40 = vmul.f32 %v231_v38, %v926_v23  ;;  %v113_v38 = vand.u32 15, %v87_v59 }
 0x109   :  { %v233_v43 = vperm.slane %v232_v40, 1 }
 0x10b   :  { %v235_v45 = vmul.f32 %v233_v43, %v956_v62  ;;  %v236_v47 = vmul.f32 %v233_v43, %v959_v63  ;;  %v237_v50 = vmul.f32 %v233_v43, %v965_v4  ;;  %v234_v51 = vmul.f32 %v233_v43, %v953_v61  ;;  %v432_v61 = vld [vmem:[#allocation7 + $0x208] sm:$0xff] }
 0x10c   :  { %726 = vmatpush.msrb.mxu3 %v432_v61  ;;  %578 = vmatpush.msrb.mxu1 %v432_v61  ;;  %v350_v43 = vadd.s32 2, %v113_v38 }
 0x10d   :  { %v242_v55 = vadd.f32 %v238_v30, %v237_v50  ;;  %v239_v56 = vadd.f32 %v238_v30, %v234_v51  ;;  %v240_v57 = vadd.f32 %v238_v30, %v235_v45  ;;  %v241_v58 = vadd.f32 %v238_v30, %v236_v47 }
 0x10e   :  { %727 = vmatpush.msrb.mxu3 %v431_v53  ;;  %579 = vmatpush.msrb.mxu1 %v431_v53  ;;  %v321_v45 = vadd.s32 1, %v113_v38  ;;  %vm358_vm14 = vcmp.lt.s32.totalorder %v350_v43, 16 }
 0x10f   :  { %v246_v62 = vmax.f32 %v242_v55, 0.0  ;;  %v243_v63 = vmax.f32 %v239_v56, 0.0  ;;  %v244_v4 = vmax.f32 %v240_v57, 0.0  ;;  %v245_v5 = vmax.f32 %v241_v58, 0.0 }
 0x110   :  { %vm329_vm15 = vcmp.lt.s32.totalorder %v321_v45, 16 }
 0x111   :  { %v1048_v60 = vsel %vm82_vm4, %v246_v62, %v938_v34  ;;  %v1053_v1 = vsel %vm82_vm4, %v243_v63, %v931_v28  ;;  %v1058_v3 = vsel %vm82_vm4, %v244_v4, %v929_v27  ;;  %v99_v27 = vand.u32 15, %v1040_v0 }
 0x112   :  { %522 = vmatmul.f32.vlgmr.msra.gmra.mxu3 %v1053_v1  ;;  %v251_v6 = vrot.slane %v1053_v1, 6  ;;  %v254_v7 = vrot.slane %v1048_v60, 6  ;;  %v280_v34 = vrot.slane %v1053_v1, 7  ;;  %v283_v8 = vrot.slane %v1048_v60, 7 }
 0x113   :  { %v309_v28 = vrot.slane %v1053_v1, 1  ;;  %v310_v10 = vrot.slane %v1058_v3, 1  ;;  %v249_v12 = vsel %vm82_vm4, %v245_v5, %v933_v29  ;;  %v319_v17 = vadd.s32 1, %v99_v27 }
 0x114   :  { %v259_v11 = vsel %vm255_vm5, %v254_v7, %v251_v6  ;;  %v288_v13 = vsel %vm284_vm7, %v283_v8, %v280_v34  ;;  %v252_v19 = vrot.slane %v1058_v3, 6  ;;  %v281_v20 = vrot.slane %v1058_v3, 7 }
 0x115   :  { %688 = vmatmul.msk.f32.vlgmr.msra.gmra.mxu1 %vm264_vm6, %v259_v11  ;;  %690 = vmatmul.msk.f32.vlgmr.msra.gmra.mxu2 %vm293_vm8, %v288_v13  ;;  %v316_v14 = vsel %vm313_vm9, %v309_v28, %v310_v10  ;;  %v311_v22 = vrot.slane %v249_v12, 1  ;;  %vm327_vm10 = vcmp.lt.s32.totalorder %v319_v17, 16  ;;  %v253_v31 = vrot.slane %v249_v12, 6 }
 0x116   :  { %551 = vmatmul.f32.vlgmr.msrb.gmra.mxu0 %v316_v14  ;;  %v258_v25 = vsel %vm255_vm5, %v251_v6, %v252_v19  ;;  %v287_v29 = vsel %vm284_vm7, %v280_v34, %v281_v20  ;;  %v282_v32 = vrot.slane %v249_v12, 7  ;;  %v340_v9 = vrot.slane %v249_v12, 2 }
 0x117   :  { %v315_v18 = vsel %vm313_vm9, %v310_v10, %v311_v22  ;;  %v257_v54 = vsel %vm255_vm5, %v252_v19, %v253_v31  ;;  %v256_v35 = vsel %vm255_vm5, %v253_v31, %v254_v7  ;;  %v341_v15 = vrot.slane %v1048_v60, 2 }
 0x118   :  { %v286_v33 = vsel %vm284_vm7, %v281_v20, %v282_v32  ;;  %v285_v2 = vsel %vm284_vm7, %v282_v32, %v283_v8  ;;  %v312_v39 = vrot.slane %v1048_v60, 1  ;;  %v338_v40 = vrot.slane %v1053_v1, 2 }
 0x119   :  { %v339_v21 = vrot.slane %v1058_v3, 2  ;;  %v343_v42 = vsel %vm342_vm13, %v340_v9, %v341_v15  ;;  %v348_v47 = vadd.s32 2, %v99_v27  ;;  %v447_v0 = vperm.slane %v926_v23, 3 }
 0x11a   :  { %525 = vmatmul.f32.gmra.mxu3 %v1058_v3  ;;  %v314_v30 = vsel %vm313_vm9, %v311_v22, %v312_v39  ;;  %v346_v50 = vsel %vm342_vm13, %v341_v15, %v338_v40  ;;  %v317_v51 = vsel %vm313_vm9, %v312_v39, %v309_v28 }
 0x11b   :  { %v345_v36 = vsel %vm342_vm13, %v338_v40, %v339_v21  ;;  %vm356_vm0 = vcmp.lt.s32.totalorder %v348_v47, 16  ;;  %v344_v41 = vsel %vm342_vm13, %v339_v21, %v340_v9 }
 0x11d   :  { %467 = vmatmul.f32.gmra.mxu1 %v258_v25  ;;  %496 = vmatmul.f32.gmra.mxu2 %v287_v29 }
 0x11e   :  { %692 = vmatmul.msk.f32.gmra.mxu0 %vm327_vm10, %v315_v18 }
 0x122   :  { %528 = vmatmul.f32.gmra.mxu3 %v249_v12 }
 0x125   :  { %689 = vmatmul.msk.f32.gmra.mxu1 %vm266_vm11, %v257_v54  ;;  %691 = vmatmul.msk.f32.gmra.mxu2 %vm295_vm12, %v286_v33 }
 0x12a   :  { %531 = vmatmul.f32.gmra.mxu3 %v1048_v60 }
 0x12d   :  { %473 = vmatmul.f32.gmra.mxu1 %v256_v35  ;;  %502 = vmatmul.f32.gmra.mxu2 %v285_v2 }
 0x132   :  { %586 = vmatmul.f32.vlgmr.msrb.gmra.mxu3 %v343_v42 }
 0x135   :  { %557 = vmatmul.f32.vlgmr.msrb.gmra.mxu2 %v314_v30  ;;  %580 = vmatmul.f32.vlgmr.msrb.gmra.mxu1 %v345_v36 }
 0x13a   :  { %695 = vmatmul.msk.f32.gmra.mxu3 %vm358_vm14, %v346_v50 }
 0x13d   :  { %693 = vmatmul.msk.f32.gmra.mxu2 %vm329_vm15, %v317_v51  ;;  %694 = vmatmul.msk.f32.gmra.mxu1 %vm356_vm0, %v344_v41 }
 0x192   :  { %v465_v52 = vpop.f32.mrf.mxu1 }
 0x193   :  { %v552_v53 = vpop.f32.mrf.mxu0  ;;  %v466_v37 = vadd.f32 %v465_v52, %v447_v0 }
 0x195   :  { %v523_v55 = vpop.f32.mrf.mxu3 }
 0x198   :  { %v494_v56 = vpop.f32.mrf.mxu2 }
 0x199   :  { %v495_v7 = vadd.f32 %v494_v56, %v466_v37 }
 0x19a   :  { %v468_v57 = vpop.f32.mrf.mxu1 }
 0x19b   :  { %v469_v1 = vadd.f32 %v468_v57, %v447_v0  ;;  %v524_v28 = vadd.f32 %v523_v55, %v495_v7  ;;  %v555_v10 = vpop.f32.mrf.mxu0  ;;  %v638_v7 = vperm.slane %v926_v23, 5 }
 0x19d   :  { %v526_v58 = vpop.f32.mrf.mxu3  ;;  %v553_v19 = vadd.f32 %v552_v53, %v524_v28 }
 0x1a0   :  { %v497_v46 = vpop.f32.mrf.mxu2 }
 0x1a1   :  { %v498_v5 = vadd.f32 %v497_v46, %v469_v1 }
 0x1a2   :  { %v471_v61 = vpop.f32.mrf.mxu1 }
 0x1a3   :  { %v527_v34 = vadd.f32 %v526_v58, %v498_v5  ;;  %v472_v8 = vadd.f32 %v471_v61, %v447_v0 }
 0x1a5   :  { %v529_v62 = vpop.f32.mrf.mxu3  ;;  %v556_v12 = vadd.f32 %v555_v10, %v527_v34 }
 0x1a8   :  { %v500_v63 = vpop.f32.mrf.mxu2 }
 0x1a9   :  { %v501_v27 = vadd.f32 %v500_v63, %v472_v8 }
 0x1aa   :  { %v474_v4 = vpop.f32.mrf.mxu1 }
 0x1ab   :  { %v475_v14 = vadd.f32 %v474_v4, %v447_v0  ;;  %v530_v20 = vadd.f32 %v529_v62, %v501_v27 }
 0x1ad   :  { %v532_v60 = vpop.f32.mrf.mxu3 }
 0x1b0   :  { %v503_v3 = vpop.f32.mrf.mxu2 }
 0x1b1   :  { %v504_v17 = vadd.f32 %v503_v3, %v475_v14 }
 0x1b2   :  { %v581_v6 = vpop.f32.mrf.mxu1 }
 0x1b3   :  { %v582_v24 = vadd.f32 %v581_v6, %v553_v19  ;;  %v533_v18 = vadd.f32 %v532_v60, %v504_v17 }
 0x1b5   :  { %v587_v11 = vpop.f32.mrf.mxu3 }
 0x1b8   :  { %v558_v13 = vpop.f32.mrf.mxu2 }
 0x1b9   :  { %v559_v25 = vadd.f32 %v558_v13, %v530_v20 }
 0x1ba   :  { %v584_v16 = vpop.f32.mrf.mxu1 }
 0x1bb   :  { %v1123_v22 = vadd.f32 %v584_v16, %v556_v12  ;;  %v588_v48 = vadd.f32 %v587_v11, %v559_v25 }
 0x1bd   :  { %v593_v29 = vadd.f32 %v1123_v22, %v582_v24  ;;  %v590_v32 = vpop.f32.mrf.mxu3 }
 0x1bf   :  { %v594_v54 = vadd.f32 %v593_v29, %v588_v48 }
 0x1c0   :  { %v561_v26 = vpop.f32.mrf.mxu2 }
 0x1c1   :  { %v562_v31 = vadd.f32 %v561_v26, %v533_v18 }
 0x1c3   :  { %v591_v33 = vadd.f32 %v590_v32, %v562_v31 }
 0x1c5   :  { %v595_v59 = vadd.f32 %v594_v54, %v591_v33 }
 0x1c7   :  { %v596_v35 = vrot.slane %v595_v59, 4 }
 0x1c9   :  { %v597_v2 = vadd.f32 %v596_v35, %v595_v59 }
 0x1cb   :  { %v598_v9 = vrot.slane %v597_v2, 2 }
 0x1cd   :  { %v599_v15 = vadd.f32 %v598_v9, %v597_v2 }
 0x1cf   :  { %v600_v38 = vrot.slane %v599_v15, 1 }
 0x1d1   :  { %v601_v39 = vadd.f32 %v600_v38, %v599_v15 }
 0x1d3   :  { %v602_v40 = vmul.f32 %v601_v39, %v943_v49 }
 0x1d5   :  { %v603_v21 = vsub.f32 %v582_v24, %v602_v40  ;;  %v604_v42 = vsub.f32 %v1123_v22, %v602_v40  ;;  %v605_v43 = vsub.f32 %v588_v48, %v602_v40  ;;  %v606_v30 = vsub.f32 %v591_v33, %v602_v40 }
 0x1d7   :  { %v607_v36 = vmul.f32 %v603_v21, %v603_v21  ;;  %v608_v45 = vmul.f32 %v604_v42, %v604_v42  ;;  %v609_v47 = vmul.f32 %v605_v43, %v605_v43  ;;  %v610_v51 = vmul.f32 %v606_v30, %v606_v30 }
 0x1d9   :  { %v611_v50 = vadd.f32 %v608_v45, %v607_v36 }
 0x1db   :  { %v612_v41 = vadd.f32 %v611_v50, %v609_v47 }
 0x1dd   :  { %v613_v52 = vadd.f32 %v612_v41, %v610_v51 }
 0x1df   :  { %v614_v55 = vrot.slane %v613_v52, 4 }
 0x1e1   :  { %v615_v56 = vadd.f32 %v614_v55, %v613_v52 }
 0x1e3   :  { %v616_v57 = vrot.slane %v615_v56, 2 }
 0x1e5   :  { %v617_v58 = vadd.f32 %v616_v57, %v615_v56 }
 0x1e7   :  { %v618_v46 = vrot.slane %v617_v58, 1 }
 0x1e9   :  { %v619_v61 = vadd.f32 %v618_v46, %v617_v58 }
 0x1eb   :  { %v620_v62 = vmul.f32 %v619_v61, %v943_v49 }
 0x1ed   :  { %v621_v63 = vadd.f32 1e-05, %v620_v62 }
 0x1ef   :  { %741 = vrsqrt.f32 %v621_v63  ;;  %vm628_vm2 = vweird.f32 %v621_v63 }
 0x1f5   :  { %v742_v4 = vpop.eup %741 }
 0x1f6   :  { %v623_v0 = vmul.f32 %v742_v4, %v621_v63  ;;  %vm629_vm1 = vweird.f32 %v742_v4 }
 0x1f7   :  { %vm630_vm3 = vmor %vm628_vm2, %vm629_vm1 }
 0x1f8   :  { %v624_v53 = vmul.f32 %v742_v4, %v623_v0 }
 0x1fa   :  { %v625_v60 = vmul.f32 0.5, %v624_v53 }
 0x1fc   :  { %v626_v1 = vsub.f32 1.5, %v625_v60 }
 0x1fe   :  { %v627_v3 = vmul.f32 %v742_v4, %v626_v1 }
 0x200   :  { %v631_v37 = vsel %vm630_vm3, %v742_v4, %v627_v3 }
 0x201   :  { %v632_v5 = vmul.f32 %v631_v37, %v926_v23 }
 0x203   :  { %v633_v6 = vperm.slane %v632_v5, 4 }
 0x205   :  { %v636_v34 = vmul.f32 %v633_v6, %v605_v43  ;;  %v634_v8 = vmul.f32 %v633_v6, %v603_v21  ;;  %v637_v11 = vmul.f32 %v633_v6, %v606_v30  ;;  %v635_v13 = vmul.f32 %v633_v6, %v604_v42 }
 0x207   :  { %v641_v49 = vadd.f32 %v638_v7, %v636_v34  ;;  %v639_v28 = vadd.f32 %v638_v7, %v634_v8  ;;  %v642_v14 = vadd.f32 %v638_v7, %v637_v11  ;;  %v640_v12 = vadd.f32 %v638_v7, %v635_v13 }
 0x209   :  { %v645_v10 = vsel %vm82_vm4, %v641_v49, %v588_v48  ;;  %v643_v27 = vsel %vm82_vm4, %v639_v28, %v582_v24  ;;  %v646_v23 = vsel %vm82_vm4, %v642_v14, %v591_v33  ;;  %v644_v16 = vsel %vm82_vm4, %v640_v12, %v1123_v22 }
 0x20a   :  { %651 = vrot.lane.b32.xlu1 %v645_v10, %s878_s3  ;;  %647 = vrot.lane.b32.xlu0 %v643_v27, %s878_s3 }
 0x212   :  { %653 = vrot.lane.b32.xlu1 %v646_v23, %s878_s3  ;;  %649 = vrot.lane.b32.xlu0 %v644_v16, %s878_s3 }
 0x27c   :  { %v652_v17 = vpop.permute.xlu1 %651  ;;  %v648_v19 = vpop.permute.xlu0 %647 }
 0x27d   :  { %v657_v20 = vadd.f32 %v652_v17, %v645_v10  ;;  %v655_v24 = vadd.f32 %v648_v19, %v643_v27 }
 0x27f   :  { %v661_v25 = vmax.f32 %v657_v20, 0.0  ;;  %v659_v29 = vmax.f32 %v655_v24, 0.0 }
 0x281   :  { %665 = vst [vmem:[#allocation10 + $0x10] sm:$0xff] %v661_v25 }
 0x282   :  { %663 = vst [vmem:[#allocation10] sm:$0xff] %v659_v29 }
 0x284   :  { %v654_v18 = vpop.permute.xlu1 %653  ;;  %v650_v26 = vpop.permute.xlu0 %649 }
 0x285   :  { %v658_v48 = vadd.f32 %v654_v18, %v646_v23  ;;  %v656_v31 = vadd.f32 %v650_v26, %v644_v16 }
 0x287   :  { %v662_v44 = vmax.f32 %v658_v48, 0.0  ;;  %v660_v22 = vmax.f32 %v656_v31, 0.0 }
 0x289   :  { %666 = vst [vmem:[#allocation10 + $0x18] sm:$0xff] %v662_v44 }
 0x28a   :  { %664 = vst [vmem:[#allocation10 + $0x8] sm:$0xff] %v660_v22 }
 0x28b   :  { %679 = dma.vmem_to_hbm [thread:$0]  %s672_s9, 512, %s674_s12, [#allocation4], %s872_s23, %s872_s23, %s873_s24  }
 0x28c   :  { %869 = dma.done.wait [#allocation4], 512  }
 0x28d   :  { %870 = vsyncadd [#allocation4], 4294966784 }
 0x28e   :  { %684 = vsyncpa [#allocation3], 1 }
 0x28f   :  { %685 = vsyncpa [#allocation6], 1 }
 0x290   :  { %686 = vsyncpa [#allocation9], 1 }
 0x291   :  { %687 = vsyncpa [#allocation4], 1 }

</bundles_post_ra>
